<compile_context>
chip_gen: v6e
topology: v6e:2x2x1
jax: 0.10.0
libtpu: 0.0.40
codegen_flags: <defaults>
</compile_context>

<pallas_src>
import math
from functools import partial

import numpy as np
import jax
import jax.numpy as jnp
from jax.experimental import pallas as pl
from jax.experimental.pallas import tpu as pltpu


# ----------------------------------------------------------------------------
# Kernel body
# ----------------------------------------------------------------------------
def _equalized_weight_kernel(w_ref, o_ref, *, c):
    # Upcast -> scale -> downcast: matches PyTorch's float multiply even for
    # bf16 storage; the extra VPU work is hidden under the HBM bound.
    o_ref[...] = (w_ref[...].astype(jnp.float32) * c).astype(o_ref.dtype)


# ----------------------------------------------------------------------------
# Chip detection / tiling helpers
# ----------------------------------------------------------------------------
def _device_kind():
    try:
        return jax.devices()[0].device_kind.lower()
    except Exception:
        return ""


def _is_v7x():
    return "v7" in _device_kind()


def _default_block_bytes():
    # v7x: faster HBM => amortize the ~0.35us/step cost with bigger blocks.
    # v5e/v6e: 2 MiB already sits at 85%+ of roofline; bigger buys ~nothing.
    return (4 << 20) if _is_v7x() else (2 << 20)


def _pick_lane_width(n_total, cap=4096):
    """Largest multiple of 128 that divides n_total, capped at `cap`.
    Returns None if n_total is not a multiple of 128."""
    if n_total % 128 != 0:
        return None
    w = (cap // 128) * 128
    while w >= 128:
        if n_total % w == 0:
            return w
        w -= 128
    return None


def _choose_tiles_2d(out_f, in_f, dtype_bytes, target_block_bytes):
    """Fallback tiling for weights whose total size is not a multiple of 128
    lanes: tile the natural [out, prod(rest)] slab (may use masked stores)."""
    sublane = max(8, 32 // dtype_bytes)  # 8 f32, 16 bf16, 32 int8/fp8

    if in_f <= 128 or in_f * sublane * dtype_bytes <= target_block_bytes:
        tile_cols = in_f
    else:
        tile_cols = max(
            128, (target_block_bytes // (sublane * dtype_bytes)) // 128 * 128
        )

    rows_budget = max(sublane, target_block_bytes // max(tile_cols * dtype_bytes, 1))
    if out_f <= rows_budget:
        tile_rows = out_f
    else:
        tile_rows = max(sublane, (rows_budget // sublane) * sublane)
    return tile_rows, tile_cols


# ----------------------------------------------------------------------------
# Public entry point
# ----------------------------------------------------------------------------
def equalized_weight(
    weight,
    *,
    block_bytes=None,
    min_pallas_bytes=8 << 20,
    donate=False,
    lane_width_cap=4096,
):
    """Pallas implementation of EqualizedWeight.forward().

    weight: N-D parameter tensor (linear [out, in], conv [out, in, kh, kw], ...).
    Returns weight * (1 / sqrt(prod(shape[1:]))), same shape & dtype.

    Below `min_pallas_bytes` (default 8 MiB) this returns a plain `w * c` so
    XLA can fuse the scale into the consumer (matmul/conv) with zero extra HBM
    traffic -- the preferred path whenever the scaled weight is not explicitly
    materialized.  Set `donate=True` when the input buffer can be reused for
    the output (input_output_aliases), saving one weight-sized HBM allocation.
    """
    shape = weight.shape
    c = 1.0 / math.sqrt(float(np.prod(shape[1:])))
    dtype_bytes = jnp.dtype(weight.dtype).itemsize
    n_total = int(np.prod(shape))
    total_bytes = n_total * dtype_bytes

    # Small (or degenerate) weights: skip the kernel entirely.  A standalone
    # HBM round trip just to scale by a constant is pure overhead.
    if weight.ndim < 2 or total_bytes < min_pallas_bytes:
        return (weight.astype(jnp.float32) * c).astype(weight.dtype)

    if block_bytes is None:
        block_bytes = _default_block_bytes()

    sublane = max(8, 32 // dtype_bytes)
    lane_w = _pick_lane_width(n_total, lane_width_cap)

    if lane_w is not None:
        # Lane-dense path: elementwise op, so re-factor the flattened weight
        # into a (rows, W) slab with W a big multiple of 128.  Every block is
        # a contiguous DMA and every store is an unmasked full-lane vst.
        rows = n_total // lane_w
        w2d = weight.reshape(rows, lane_w)
        tile_cols = lane_w
        rows_budget = max(sublane, block_bytes // max(tile_cols * dtype_bytes, 1))
        if rows <= rows_budget:
            tile_rows = rows  # full-extent block: always layout-legal
        else:
            tile_rows = max(sublane, (rows_budget // sublane) * sublane)
        grid = (pl.cdiv(rows, tile_rows),)
        in_spec = pl.BlockSpec((tile_rows, tile_cols), lambda i: (i, 0))
        out_spec = pl.BlockSpec((tile_rows, tile_cols), lambda i: (i, 0))
        out2d_shape = (rows, lane_w)
        sem_plain = (pltpu.PARALLEL,)
        sem_core = (pltpu.CORE_PARALLEL,)
    else:
        # Fallback (total size not a multiple of 128): natural 2-D slab.
        out_f = shape[0]
        in_f = n_total // out_f
        w2d = weight.reshape(out_f, in_f)
        tile_rows, tile_cols = _choose_tiles_2d(out_f, in_f, dtype_bytes, block_bytes)
        grid = (pl.cdiv(out_f, tile_rows), pl.cdiv(in_f, tile_cols))
        in_spec = pl.BlockSpec((tile_rows, tile_cols), lambda i, j: (i, j))
        out_spec = pl.BlockSpec((tile_rows, tile_cols), lambda i, j: (i, j))
        out2d_shape = (out_f, in_f)
        sem_plain = (pltpu.PARALLEL, pltpu.PARALLEL)
        sem_core = (pltpu.CORE_PARALLEL, pltpu.PARALLEL)

    cost = pl.CostEstimate(
        flops=n_total,
        transcendentals=0,
        bytes_accessed=2 * total_bytes,
    )
    io_alias = {0: 0} if donate else {}

    def _call(dim_sem):
        return pl.pallas_call(
            partial(_equalized_weight_kernel, c=c),
            out_shape=jax.ShapeDtypeStruct(out2d_shape, weight.dtype),
            grid_spec=pltpu.PrefetchScalarGridSpec(
                num_scalar_prefetch=0,
                grid=grid,
                in_specs=[in_spec],
                out_specs=out_spec,
            ),
            compiler_params=pltpu.CompilerParams(
                dimension_semantics=dim_sem,
                vmem_limit_bytes=32 * 1024 * 1024,
            ),
            cost_estimate=cost,
            input_output_aliases=io_alias,
        )(w2d)

    if _is_v7x():
        # Shard the streaming grid across both TensorCores on v7x; fall back
        # to plain "parallel" if this particular lowering rejects it.
        try:
            out2d = _call(sem_core)
        except Exception:
            out2d = _call(sem_plain)
    else:
        out2d = _call(sem_plain)

    return out2d.reshape(shape)


# ----------------------------------------------------------------------------
# Pure-JAX reference (matches the PyTorch float multiply)
# ----------------------------------------------------------------------------
def _ref(weight):
    c = 1.0 / math.sqrt(float(np.prod(weight.shape[1:])))
    return (weight.astype(jnp.float32) * c).astype(weight.dtype)


if __name__ == "__main__":
    key = jax.random.PRNGKey(0)
    k1, k2, k3, k4, k5, k6 = jax.random.split(key, 6)

    # 1) Linear-style weight (Pallas lane-dense path: N = 256*512 -> W=4096).
    w_lin = jax.random.normal(k1, (256, 512), dtype=jnp.float32)
    out = equalized_weight(w_lin, min_pallas_bytes=0)
    jax.block_until_ready(out)
    np.testing.assert_allclose(
        np.asarray(out), np.asarray(_ref(w_lin)), rtol=1e-6, atol=1e-6
    )

    # 2) Conv-style N-D weight [out_c, in_c, kh, kw]: flattened width 576 would
    #    force masked stores; lane-dense re-factor gives W=4096, rows=9.
    w_conv = jax.random.normal(k2, (64, 64, 3, 3), dtype=jnp.float32)
    out = equalized_weight(w_conv, min_pallas_bytes=0)
    jax.block_until_ready(out)
    np.testing.assert_allclose(
        np.asarray(out), np.asarray(_ref(w_conv)), rtol=1e-6, atol=1e-6
    )

    # 3) bf16 storage: multiply in f32, cast back (lane-dense, sublane-packed).
    w_bf16 = jax.random.normal(k3, (128, 384), dtype=jnp.bfloat16)
    out = equalized_weight(w_bf16, min_pallas_bytes=0)
    jax.block_until_ready(out)
    np.testing.assert_allclose(
        np.asarray(out.astype(jnp.float32)),
        np.asarray(_ref(w_bf16).astype(jnp.float32)),
        rtol=1e-2,
        atol=1e-2,
    )

    # 4) Odd shape whose total size is not a multiple of 128: fallback 2-D
    #    full-extent tiling (correctness path).
    w_odd = jax.random.normal(k4, (33, 7, 3, 3), dtype=jnp.float32)
    out = equalized_weight(w_odd, min_pallas_bytes=0)
    jax.block_until_ready(out)
    np.testing.assert_allclose(
        np.asarray(out), np.asarray(_ref(w_odd)), rtol=1e-6, atol=1e-6
    )

    # 5) Donated input buffer (input_output_aliases={0: 0}).  Reference is
    #    computed before the call since the input buffer may be reused.
    w_don = jax.random.normal(k5, (128, 256), dtype=jnp.float32)
    ref_don = np.asarray(_ref(w_don))
    out = equalized_weight(w_don, min_pallas_bytes=0, donate=True)
    jax.block_until_ready(out)
    np.testing.assert_allclose(np.asarray(out), ref_don, rtol=1e-6, atol=1e-6)

    # 6) Small weight with the default (raised) threshold: bypass path, plain
    #    `w * c` that XLA fuses into the consumer.
    w_small = jax.random.normal(k6, (32, 128), dtype=jnp.float32)
    out = equalized_weight(w_small)
    jax.block_until_ready(out)
    np.testing.assert_allclose(
        np.asarray(out), np.asarray(_ref(w_small)), rtol=1e-6, atol=1e-6
    )

    print("KERNEL_OK")
</pallas_src>

<mosaic_0001>
module attributes {stable_mosaic.version = 11 : i64} {
  func.func @_equalized_weight_kernel(%arg0: i32, %arg1: memref<32x4096xf32, #tpu.memory_space<vmem>>, %arg2: memref<32x4096xf32, #tpu.memory_space<vmem>>) attributes {dimension_semantics = [#tpu.dimension_semantics<parallel>], iteration_bounds = array<i64: 1>, scalar_prefetch = 0 : i64, scratch_operands = 0 : i64, tpu.core_type = #tpu.core_type<tc>, window_params = [{transform_indices = @transform_0, window_bounds = array<i64: 32, 4096>}, {transform_indices = @transform_1, window_bounds = array<i64: 32, 4096>}]} {
    %c0 = arith.constant 0 : index
    %c0_0 = arith.constant 0 : index
    %0 = vector.load %arg1[%c0, %c0_0] : memref<32x4096xf32, #tpu.memory_space<vmem>>, vector<32x4096xf32>
    %cst = arith.constant 0.0441941731 : f32
    %1 = vector.broadcast %cst : f32 to vector<32x4096xf32>
    %2 = arith.mulf %0, %1 : vector<32x4096xf32>
    %c0_1 = arith.constant 0 : index
    %c0_2 = arith.constant 0 : index
    %3 = vector.load %arg2[%c0_1, %c0_2] : memref<32x4096xf32, #tpu.memory_space<vmem>>, vector<32x4096xf32>
    tpu.vector_store %arg2[%c0_1, %c0_2], %2 {strides = array<i32>} : memref<32x4096xf32, #tpu.memory_space<vmem>>, vector<32x4096xf32>,
    return
  }
  func.func @transform_0(%arg0: i32) -> (i32, i32) {
    %c0_i32 = arith.constant 0 : i32
    %c0_i32_0 = arith.constant 0 : i32
    return %arg0, %c0_i32 : i32, i32
  }
  func.func @transform_1(%arg0: i32) -> (i32, i32) {
    %c0_i32 = arith.constant 0 : i32
    %c0_i32_0 = arith.constant 0 : i32
    return %arg0, %c0_i32 : i32, i32
  }
}

</mosaic_0001>

<bundles_post_ra>
// kernel: tpu_custom_call.1
= control target key start
LH: loop header
LB: loop body
LE: loop exit
PB: predicated region body
PF: predicated region fallthrough
CT: control target
= control target key end

     0   :  { %6 = vsyncpa [#allocation3], 0  ;;  %s498_s0 = inlined_call_operand.hbm [shape: f32[32,4096], index: 0, kind: input, shape index: {}]   ;;  %s499_s1 = inlined_call_operand.hbm [shape: f32[32,4096], index: 1, kind: output, shape index: {}]  }
   0x1   :  { %7 = vsyncpa [#allocation4], 0  ;;  %s472_s6 = smov [#allocation2]  }
   0x2   :  { %s13_s7 = sshll.u32 %s472_s6, 4  ;;  %s14_s7 = int_to_ptr.vmem [resolvable:$true] %s13_s7 }
   0x3   :  { %s436_s8 = scalar_lea.vmem %s14_s7, 16384  ;;  %p441_p1 = scmp.lt.s32.totalorder %s14_s7, %s14_s7 }
   0x4   :  { %p437_p0 = scmp.ne.s32.totalorder %s14_s7, %s436_s8  ;;  %p442_p2 = scmp.lt.s32.totalorder %s436_s8, %s436_s8 }
   0x6   :  { %p443_p3 = por %p442_p2, %p441_p1 }
   0x8   :  { %p444_p4 = pnand %p443_p3, %p437_p0 }
   0xa   :  { %447 = shalt.err (!%p444_p4)
}
   0xb   :  { %s473_s9 = smov 4096   ;;  %s474_s10 = smov 256  }
   0xc   :  { %19 = dma.hbm_to_vmem [thread:$0]  %s498_s0, 16384, %s14_s7, [#allocation3], %s473_s9, %s473_s9, %s474_s10  }
   0xd   :  { %468 = dma.done.wait [#allocation3], 16384  }
   0xe   :  { %469 = vsyncadd [#allocation3], 4294950912  ;;  %v23_v0 = vld [vmem:[#allocation2] sm:$0xff]  ;;  %v24_v1 = vld [vmem:[#allocation2 + $0x8] sm:$0xff]  ;;  %s475_s0 = smov [#allocation5]  }
   0xf   :  { %v25_v2 = vld [vmem:[#allocation2 + $0x10] sm:$0xff]  ;;  %v151_v3 = vmul.f32 0.044194173, %v23_v0  ;;  %v152_v4 = vmul.f32 0.044194173, %v24_v1  ;;  %v26_v6 = vld [vmem:[#allocation2 + $0x18] sm:$0xff] }
  0x10   :  { %v153_v5 = vmul.f32 0.044194173, %v25_v2  ;;  %v27_v7 = vld [vmem:[#allocation2 + $0x20] sm:$0xff]  ;;  %v28_v8 = vld [vmem:[#allocation2 + $0x28] sm:$0xff]  ;;  %v154_v9 = vmul.f32 0.044194173, %v26_v6 }
  0x11   :  { %279 = vst [vmem:[#allocation5] sm:$0xff] %v151_v3  ;;  %280 = vst [vmem:[#allocation5 + $0x8] sm:$0xff] %v152_v4  ;;  %v155_v10 = vmul.f32 0.044194173, %v27_v7  ;;  %v156_v11 = vmul.f32 0.044194173, %v28_v8 }
  0x12   :  { %281 = vst [vmem:[#allocation5 + $0x10] sm:$0xff] %v153_v5  ;;  %v29_v12 = vld [vmem:[#allocation2 + $0x30] sm:$0xff]  ;;  %v30_v13 = vld [vmem:[#allocation2 + $0x38] sm:$0xff]  ;;  %v31_v14 = vld [vmem:[#allocation2 + $0x40] sm:$0xff]  ;;  %s412_s13 = sshll.u32 %s475_s0, 4  ;;  %s413_s13 = int_to_ptr.vmem [resolvable:$true] %s412_s13 }
  0x13   :  { %282 = vst [vmem:[#allocation5 + $0x18] sm:$0xff] %v154_v9  ;;  %283 = vst [vmem:[#allocation5 + $0x20] sm:$0xff] %v155_v10  ;;  %v157_v15 = vmul.f32 0.044194173, %v29_v12  ;;  %v158_v16 = vmul.f32 0.044194173, %v30_v13  ;;  %p453_p6 = scmp.lt.s32.totalorder %s413_s13, %s413_s13 }
  0x14   :  { %284 = vst [vmem:[#allocation5 + $0x28] sm:$0xff] %v156_v11  ;;  %v159_v17 = vmul.f32 0.044194173, %v31_v14  ;;  %v32_v18 = vld [vmem:[#allocation2 + $0x48] sm:$0xff]  ;;  %v33_v19 = vld [vmem:[#allocation2 + $0x50] sm:$0xff]  ;;  %v34_v20 = vld [vmem:[#allocation2 + $0x58] sm:$0xff] }
  0x15   :  { %285 = vst [vmem:[#allocation5 + $0x30] sm:$0xff] %v157_v15  ;;  %286 = vst [vmem:[#allocation5 + $0x38] sm:$0xff] %v158_v16  ;;  %v160_v21 = vmul.f32 0.044194173, %v32_v18  ;;  %v161_v22 = vmul.f32 0.044194173, %v33_v19 }
  0x16   :  { %287 = vst [vmem:[#allocation5 + $0x40] sm:$0xff] %v159_v17  ;;  %v162_v23 = vmul.f32 0.044194173, %v34_v20  ;;  %v35_v24 = vld [vmem:[#allocation2 + $0x60] sm:$0xff]  ;;  %v36_v25 = vld [vmem:[#allocation2 + $0x68] sm:$0xff]  ;;  %v37_v26 = vld [vmem:[#allocation2 + $0x70] sm:$0xff] }
  0x17   :  { %288 = vst [vmem:[#allocation5 + $0x48] sm:$0xff] %v160_v21  ;;  %289 = vst [vmem:[#allocation5 + $0x50] sm:$0xff] %v161_v22  ;;  %v163_v27 = vmul.f32 0.044194173, %v35_v24  ;;  %v164_v28 = vmul.f32 0.044194173, %v36_v25 }
  0x18   :  { %290 = vst [vmem:[#allocation5 + $0x58] sm:$0xff] %v162_v23  ;;  %v165_v29 = vmul.f32 0.044194173, %v37_v26  ;;  %v38_v30 = vld [vmem:[#allocation2 + $0x78] sm:$0xff]  ;;  %v39_v31 = vld [vmem:[#allocation2 + $0x80] sm:$0xff]  ;;  %v40_v32 = vld [vmem:[#allocation2 + $0x88] sm:$0xff] }
  0x19   :  { %291 = vst [vmem:[#allocation5 + $0x60] sm:$0xff] %v163_v27  ;;  %292 = vst [vmem:[#allocation5 + $0x68] sm:$0xff] %v164_v28  ;;  %v166_v33 = vmul.f32 0.044194173, %v38_v30  ;;  %v167_v34 = vmul.f32 0.044194173, %v39_v31 }
  0x1a   :  { %293 = vst [vmem:[#allocation5 + $0x70] sm:$0xff] %v165_v29  ;;  %v168_v35 = vmul.f32 0.044194173, %v40_v32  ;;  %v41_v36 = vld [vmem:[#allocation2 + $0x90] sm:$0xff]  ;;  %v42_v37 = vld [vmem:[#allocation2 + $0x98] sm:$0xff]  ;;  %v43_v38 = vld [vmem:[#allocation2 + $0xa0] sm:$0xff] }
  0x1b   :  { %294 = vst [vmem:[#allocation5 + $0x78] sm:$0xff] %v166_v33  ;;  %295 = vst [vmem:[#allocation5 + $0x80] sm:$0xff] %v167_v34  ;;  %v169_v39 = vmul.f32 0.044194173, %v41_v36  ;;  %v170_v40 = vmul.f32 0.044194173, %v42_v37 }
  0x1c   :  { %296 = vst [vmem:[#allocation5 + $0x88] sm:$0xff] %v168_v35  ;;  %v171_v41 = vmul.f32 0.044194173, %v43_v38  ;;  %v44_v42 = vld [vmem:[#allocation2 + $0xa8] sm:$0xff]  ;;  %v45_v43 = vld [vmem:[#allocation2 + $0xb0] sm:$0xff]  ;;  %v46_v44 = vld [vmem:[#allocation2 + $0xb8] sm:$0xff] }
  0x1d   :  { %297 = vst [vmem:[#allocation5 + $0x90] sm:$0xff] %v169_v39  ;;  %298 = vst [vmem:[#allocation5 + $0x98] sm:$0xff] %v170_v40  ;;  %v172_v45 = vmul.f32 0.044194173, %v44_v42  ;;  %v173_v46 = vmul.f32 0.044194173, %v45_v43 }
  0x1e   :  { %299 = vst [vmem:[#allocation5 + $0xa0] sm:$0xff] %v171_v41  ;;  %v174_v47 = vmul.f32 0.044194173, %v46_v44  ;;  %v47_v48 = vld [vmem:[#allocation2 + $0xc0] sm:$0xff]  ;;  %v48_v49 = vld [vmem:[#allocation2 + $0xc8] sm:$0xff]  ;;  %v49_v50 = vld [vmem:[#allocation2 + $0xd0] sm:$0xff] }
  0x1f   :  { %300 = vst [vmem:[#allocation5 + $0xa8] sm:$0xff] %v172_v45  ;;  %301 = vst [vmem:[#allocation5 + $0xb0] sm:$0xff] %v173_v46  ;;  %v175_v51 = vmul.f32 0.044194173, %v47_v48  ;;  %v176_v52 = vmul.f32 0.044194173, %v48_v49 }
  0x20   :  { %302 = vst [vmem:[#allocation5 + $0xb8] sm:$0xff] %v174_v47  ;;  %v177_v53 = vmul.f32 0.044194173, %v49_v50  ;;  %v50_v54 = vld [vmem:[#allocation2 + $0xd8] sm:$0xff]  ;;  %v51_v55 = vld [vmem:[#allocation2 + $0xe0] sm:$0xff]  ;;  %v52_v56 = vld [vmem:[#allocation2 + $0xe8] sm:$0xff] }
  0x21   :  { %303 = vst [vmem:[#allocation5 + $0xc0] sm:$0xff] %v175_v51  ;;  %304 = vst [vmem:[#allocation5 + $0xc8] sm:$0xff] %v176_v52  ;;  %v178_v57 = vmul.f32 0.044194173, %v50_v54  ;;  %v179_v58 = vmul.f32 0.044194173, %v51_v55 }
  0x22   :  { %305 = vst [vmem:[#allocation5 + $0xd0] sm:$0xff] %v177_v53  ;;  %v180_v59 = vmul.f32 0.044194173, %v52_v56  ;;  %v53_v60 = vld [vmem:[#allocation2 + $0xf0] sm:$0xff]  ;;  %v54_v61 = vld [vmem:[#allocation2 + $0xf8] sm:$0xff]  ;;  %v55_v62 = vld [vmem:[#allocation2 + $0x100] sm:$0xff] }
  0x23   :  { %306 = vst [vmem:[#allocation5 + $0xd8] sm:$0xff] %v178_v57  ;;  %307 = vst [vmem:[#allocation5 + $0xe0] sm:$0xff] %v179_v58  ;;  %v181_v63 = vmul.f32 0.044194173, %v53_v60  ;;  %v182_v0 = vmul.f32 0.044194173, %v54_v61 }
  0x24   :  { %308 = vst [vmem:[#allocation5 + $0xe8] sm:$0xff] %v180_v59  ;;  %v183_v1 = vmul.f32 0.044194173, %v55_v62  ;;  %v56_v2 = vld [vmem:[#allocation2 + $0x108] sm:$0xff]  ;;  %v57_v3 = vld [vmem:[#allocation2 + $0x110] sm:$0xff]  ;;  %v58_v4 = vld [vmem:[#allocation2 + $0x118] sm:$0xff] }
  0x25   :  { %309 = vst [vmem:[#allocation5 + $0xf0] sm:$0xff] %v181_v63  ;;  %310 = vst [vmem:[#allocation5 + $0xf8] sm:$0xff] %v182_v0  ;;  %v184_v5 = vmul.f32 0.044194173, %v56_v2  ;;  %v185_v6 = vmul.f32 0.044194173, %v57_v3 }
  0x26   :  { %311 = vst [vmem:[#allocation5 + $0x100] sm:$0xff] %v183_v1  ;;  %v186_v7 = vmul.f32 0.044194173, %v58_v4  ;;  %v59_v8 = vld [vmem:[#allocation2 + $0x120] sm:$0xff]  ;;  %v60_v9 = vld [vmem:[#allocation2 + $0x128] sm:$0xff]  ;;  %v61_v10 = vld [vmem:[#allocation2 + $0x130] sm:$0xff] }
  0x27   :  { %312 = vst [vmem:[#allocation5 + $0x108] sm:$0xff] %v184_v5  ;;  %313 = vst [vmem:[#allocation5 + $0x110] sm:$0xff] %v185_v6  ;;  %v187_v11 = vmul.f32 0.044194173, %v59_v8  ;;  %v188_v12 = vmul.f32 0.044194173, %v60_v9 }
  0x28   :  { %314 = vst [vmem:[#allocation5 + $0x118] sm:$0xff] %v186_v7  ;;  %v189_v13 = vmul.f32 0.044194173, %v61_v10  ;;  %v62_v14 = vld [vmem:[#allocation2 + $0x138] sm:$0xff]  ;;  %v63_v15 = vld [vmem:[#allocation2 + $0x140] sm:$0xff]  ;;  %v64_v16 = vld [vmem:[#allocation2 + $0x148] sm:$0xff] }
  0x29   :  { %315 = vst [vmem:[#allocation5 + $0x120] sm:$0xff] %v187_v11  ;;  %316 = vst [vmem:[#allocation5 + $0x128] sm:$0xff] %v188_v12  ;;  %v190_v17 = vmul.f32 0.044194173, %v62_v14  ;;  %v191_v18 = vmul.f32 0.044194173, %v63_v15 }
  0x2a   :  { %317 = vst [vmem:[#allocation5 + $0x130] sm:$0xff] %v189_v13  ;;  %v192_v19 = vmul.f32 0.044194173, %v64_v16  ;;  %v65_v20 = vld [vmem:[#allocation2 + $0x150] sm:$0xff]  ;;  %v66_v21 = vld [vmem:[#allocation2 + $0x158] sm:$0xff]  ;;  %v67_v22 = vld [vmem:[#allocation2 + $0x160] sm:$0xff] }
  0x2b   :  { %318 = vst [vmem:[#allocation5 + $0x138] sm:$0xff] %v190_v17  ;;  %319 = vst [vmem:[#allocation5 + $0x140] sm:$0xff] %v191_v18  ;;  %v193_v23 = vmul.f32 0.044194173, %v65_v20  ;;  %v194_v24 = vmul.f32 0.044194173, %v66_v21 }
  0x2c   :  { %320 = vst [vmem:[#allocation5 + $0x148] sm:$0xff] %v192_v19  ;;  %v195_v25 = vmul.f32 0.044194173, %v67_v22  ;;  %v68_v26 = vld [vmem:[#allocation2 + $0x168] sm:$0xff]  ;;  %v69_v27 = vld [vmem:[#allocation2 + $0x170] sm:$0xff]  ;;  %v70_v28 = vld [vmem:[#allocation2 + $0x178] sm:$0xff] }
  0x2d   :  { %321 = vst [vmem:[#allocation5 + $0x150] sm:$0xff] %v193_v23  ;;  %322 = vst [vmem:[#allocation5 + $0x158] sm:$0xff] %v194_v24  ;;  %v196_v29 = vmul.f32 0.044194173, %v68_v26  ;;  %v197_v30 = vmul.f32 0.044194173, %v69_v27 }
  0x2e   :  { %323 = vst [vmem:[#allocation5 + $0x160] sm:$0xff] %v195_v25  ;;  %v198_v31 = vmul.f32 0.044194173, %v70_v28  ;;  %v71_v32 = vld [vmem:[#allocation2 + $0x180] sm:$0xff]  ;;  %v72_v33 = vld [vmem:[#allocation2 + $0x188] sm:$0xff]  ;;  %v73_v34 = vld [vmem:[#allocation2 + $0x190] sm:$0xff] }
  0x2f   :  { %324 = vst [vmem:[#allocation5 + $0x168] sm:$0xff] %v196_v29  ;;  %325 = vst [vmem:[#allocation5 + $0x170] sm:$0xff] %v197_v30  ;;  %v199_v35 = vmul.f32 0.044194173, %v71_v32  ;;  %v200_v36 = vmul.f32 0.044194173, %v72_v33 }
  0x30   :  { %326 = vst [vmem:[#allocation5 + $0x178] sm:$0xff] %v198_v31  ;;  %v201_v37 = vmul.f32 0.044194173, %v73_v34  ;;  %v74_v38 = vld [vmem:[#allocation2 + $0x198] sm:$0xff]  ;;  %v75_v39 = vld [vmem:[#allocation2 + $0x1a0] sm:$0xff]  ;;  %v76_v40 = vld [vmem:[#allocation2 + $0x1a8] sm:$0xff] }
  0x31   :  { %327 = vst [vmem:[#allocation5 + $0x180] sm:$0xff] %v199_v35  ;;  %328 = vst [vmem:[#allocation5 + $0x188] sm:$0xff] %v200_v36  ;;  %v202_v41 = vmul.f32 0.044194173, %v74_v38  ;;  %v203_v42 = vmul.f32 0.044194173, %v75_v39 }
  0x32   :  { %329 = vst [vmem:[#allocation5 + $0x190] sm:$0xff] %v201_v37  ;;  %v204_v43 = vmul.f32 0.044194173, %v76_v40  ;;  %v77_v44 = vld [vmem:[#allocation2 + $0x1b0] sm:$0xff]  ;;  %v78_v45 = vld [vmem:[#allocation2 + $0x1b8] sm:$0xff]  ;;  %v79_v46 = vld [vmem:[#allocation2 + $0x1c0] sm:$0xff] }
  0x33   :  { %330 = vst [vmem:[#allocation5 + $0x198] sm:$0xff] %v202_v41  ;;  %331 = vst [vmem:[#allocation5 + $0x1a0] sm:$0xff] %v203_v42  ;;  %v205_v47 = vmul.f32 0.044194173, %v77_v44  ;;  %v206_v48 = vmul.f32 0.044194173, %v78_v45 }
  0x34   :  { %332 = vst [vmem:[#allocation5 + $0x1a8] sm:$0xff] %v204_v43  ;;  %v207_v49 = vmul.f32 0.044194173, %v79_v46  ;;  %v80_v50 = vld [vmem:[#allocation2 + $0x1c8] sm:$0xff]  ;;  %v81_v51 = vld [vmem:[#allocation2 + $0x1d0] sm:$0xff]  ;;  %v82_v52 = vld [vmem:[#allocation2 + $0x1d8] sm:$0xff] }
  0x35   :  { %333 = vst [vmem:[#allocation5 + $0x1b0] sm:$0xff] %v205_v47  ;;  %334 = vst [vmem:[#allocation5 + $0x1b8] sm:$0xff] %v206_v48  ;;  %v208_v53 = vmul.f32 0.044194173, %v80_v50  ;;  %v209_v54 = vmul.f32 0.044194173, %v81_v51 }
  0x36   :  { %335 = vst [vmem:[#allocation5 + $0x1c0] sm:$0xff] %v207_v49  ;;  %v210_v55 = vmul.f32 0.044194173, %v82_v52  ;;  %v83_v56 = vld [vmem:[#allocation2 + $0x1e0] sm:$0xff]  ;;  %v84_v57 = vld [vmem:[#allocation2 + $0x1e8] sm:$0xff]  ;;  %v85_v58 = vld [vmem:[#allocation2 + $0x1f0] sm:$0xff] }
  0x37   :  { %336 = vst [vmem:[#allocation5 + $0x1c8] sm:$0xff] %v208_v53  ;;  %337 = vst [vmem:[#allocation5 + $0x1d0] sm:$0xff] %v209_v54  ;;  %v211_v59 = vmul.f32 0.044194173, %v83_v56  ;;  %v212_v60 = vmul.f32 0.044194173, %v84_v57 }
  0x38   :  { %338 = vst [vmem:[#allocation5 + $0x1d8] sm:$0xff] %v210_v55  ;;  %v213_v61 = vmul.f32 0.044194173, %v85_v58  ;;  %v86_v62 = vld [vmem:[#allocation2 + $0x1f8] sm:$0xff]  ;;  %v87_v63 = vld [vmem:[#allocation2 + $0x200] sm:$0xff]  ;;  %v88_v0 = vld [vmem:[#allocation2 + $0x208] sm:$0xff] }
  0x39   :  { %339 = vst [vmem:[#allocation5 + $0x1e0] sm:$0xff] %v211_v59  ;;  %340 = vst [vmem:[#allocation5 + $0x1e8] sm:$0xff] %v212_v60  ;;  %v214_v1 = vmul.f32 0.044194173, %v86_v62  ;;  %v215_v2 = vmul.f32 0.044194173, %v87_v63 }
  0x3a   :  { %341 = vst [vmem:[#allocation5 + $0x1f0] sm:$0xff] %v213_v61  ;;  %v216_v3 = vmul.f32 0.044194173, %v88_v0  ;;  %v89_v4 = vld [vmem:[#allocation2 + $0x210] sm:$0xff]  ;;  %v90_v5 = vld [vmem:[#allocation2 + $0x218] sm:$0xff]  ;;  %v91_v6 = vld [vmem:[#allocation2 + $0x220] sm:$0xff] }
  0x3b   :  { %342 = vst [vmem:[#allocation5 + $0x1f8] sm:$0xff] %v214_v1  ;;  %343 = vst [vmem:[#allocation5 + $0x200] sm:$0xff] %v215_v2  ;;  %v217_v7 = vmul.f32 0.044194173, %v89_v4  ;;  %v218_v8 = vmul.f32 0.044194173, %v90_v5 }
  0x3c   :  { %344 = vst [vmem:[#allocation5 + $0x208] sm:$0xff] %v216_v3  ;;  %v219_v9 = vmul.f32 0.044194173, %v91_v6  ;;  %v92_v10 = vld [vmem:[#allocation2 + $0x228] sm:$0xff]  ;;  %v93_v11 = vld [vmem:[#allocation2 + $0x230] sm:$0xff]  ;;  %v94_v12 = vld [vmem:[#allocation2 + $0x238] sm:$0xff] }
  0x3d   :  { %345 = vst [vmem:[#allocation5 + $0x210] sm:$0xff] %v217_v7  ;;  %346 = vst [vmem:[#allocation5 + $0x218] sm:$0xff] %v218_v8  ;;  %v220_v13 = vmul.f32 0.044194173, %v92_v10  ;;  %v221_v14 = vmul.f32 0.044194173, %v93_v11 }
  0x3e   :  { %347 = vst [vmem:[#allocation5 + $0x220] sm:$0xff] %v219_v9  ;;  %v222_v15 = vmul.f32 0.044194173, %v94_v12  ;;  %v95_v16 = vld [vmem:[#allocation2 + $0x240] sm:$0xff]  ;;  %v96_v17 = vld [vmem:[#allocation2 + $0x248] sm:$0xff]  ;;  %v97_v18 = vld [vmem:[#allocation2 + $0x250] sm:$0xff] }
  0x3f   :  { %348 = vst [vmem:[#allocation5 + $0x228] sm:$0xff] %v220_v13  ;;  %349 = vst [vmem:[#allocation5 + $0x230] sm:$0xff] %v221_v14  ;;  %v223_v19 = vmul.f32 0.044194173, %v95_v16  ;;  %v224_v20 = vmul.f32 0.044194173, %v96_v17 }
  0x40   :  { %350 = vst [vmem:[#allocation5 + $0x238] sm:$0xff] %v222_v15  ;;  %v225_v21 = vmul.f32 0.044194173, %v97_v18  ;;  %v98_v22 = vld [vmem:[#allocation2 + $0x258] sm:$0xff]  ;;  %v99_v23 = vld [vmem:[#allocation2 + $0x260] sm:$0xff]  ;;  %v100_v24 = vld [vmem:[#allocation2 + $0x268] sm:$0xff] }
  0x41   :  { %351 = vst [vmem:[#allocation5 + $0x240] sm:$0xff] %v223_v19  ;;  %352 = vst [vmem:[#allocation5 + $0x248] sm:$0xff] %v224_v20  ;;  %v226_v25 = vmul.f32 0.044194173, %v98_v22  ;;  %v227_v26 = vmul.f32 0.044194173, %v99_v23 }
  0x42   :  { %353 = vst [vmem:[#allocation5 + $0x250] sm:$0xff] %v225_v21  ;;  %v228_v27 = vmul.f32 0.044194173, %v100_v24  ;;  %v101_v28 = vld [vmem:[#allocation2 + $0x270] sm:$0xff]  ;;  %v102_v29 = vld [vmem:[#allocation2 + $0x278] sm:$0xff]  ;;  %v103_v30 = vld [vmem:[#allocation2 + $0x280] sm:$0xff] }
  0x43   :  { %354 = vst [vmem:[#allocation5 + $0x258] sm:$0xff] %v226_v25  ;;  %355 = vst [vmem:[#allocation5 + $0x260] sm:$0xff] %v227_v26  ;;  %v229_v31 = vmul.f32 0.044194173, %v101_v28  ;;  %v230_v32 = vmul.f32 0.044194173, %v102_v29 }
  0x44   :  { %356 = vst [vmem:[#allocation5 + $0x268] sm:$0xff] %v228_v27  ;;  %v231_v33 = vmul.f32 0.044194173, %v103_v30  ;;  %v104_v34 = vld [vmem:[#allocation2 + $0x288] sm:$0xff]  ;;  %v105_v35 = vld [vmem:[#allocation2 + $0x290] sm:$0xff]  ;;  %v106_v36 = vld [vmem:[#allocation2 + $0x298] sm:$0xff] }
  0x45   :  { %357 = vst [vmem:[#allocation5 + $0x270] sm:$0xff] %v229_v31  ;;  %358 = vst [vmem:[#allocation5 + $0x278] sm:$0xff] %v230_v32  ;;  %v232_v37 = vmul.f32 0.044194173, %v104_v34  ;;  %v233_v38 = vmul.f32 0.044194173, %v105_v35 }
  0x46   :  { %359 = vst [vmem:[#allocation5 + $0x280] sm:$0xff] %v231_v33  ;;  %v234_v39 = vmul.f32 0.044194173, %v106_v36  ;;  %v107_v40 = vld [vmem:[#allocation2 + $0x2a0] sm:$0xff]  ;;  %v108_v41 = vld [vmem:[#allocation2 + $0x2a8] sm:$0xff]  ;;  %v109_v42 = vld [vmem:[#allocation2 + $0x2b0] sm:$0xff] }
  0x47   :  { %360 = vst [vmem:[#allocation5 + $0x288] sm:$0xff] %v232_v37  ;;  %361 = vst [vmem:[#allocation5 + $0x290] sm:$0xff] %v233_v38  ;;  %v235_v43 = vmul.f32 0.044194173, %v107_v40  ;;  %v236_v44 = vmul.f32 0.044194173, %v108_v41 }
  0x48   :  { %362 = vst [vmem:[#allocation5 + $0x298] sm:$0xff] %v234_v39  ;;  %v237_v45 = vmul.f32 0.044194173, %v109_v42  ;;  %v110_v46 = vld [vmem:[#allocation2 + $0x2b8] sm:$0xff]  ;;  %v111_v47 = vld [vmem:[#allocation2 + $0x2c0] sm:$0xff]  ;;  %v112_v48 = vld [vmem:[#allocation2 + $0x2c8] sm:$0xff] }
  0x49   :  { %363 = vst [vmem:[#allocation5 + $0x2a0] sm:$0xff] %v235_v43  ;;  %364 = vst [vmem:[#allocation5 + $0x2a8] sm:$0xff] %v236_v44  ;;  %v238_v49 = vmul.f32 0.044194173, %v110_v46  ;;  %v239_v50 = vmul.f32 0.044194173, %v111_v47 }
  0x4a   :  { %365 = vst [vmem:[#allocation5 + $0x2b0] sm:$0xff] %v237_v45  ;;  %v240_v51 = vmul.f32 0.044194173, %v112_v48  ;;  %v113_v52 = vld [vmem:[#allocation2 + $0x2d0] sm:$0xff]  ;;  %v114_v53 = vld [vmem:[#allocation2 + $0x2d8] sm:$0xff]  ;;  %v115_v54 = vld [vmem:[#allocation2 + $0x2e0] sm:$0xff] }
  0x4b   :  { %366 = vst [vmem:[#allocation5 + $0x2b8] sm:$0xff] %v238_v49  ;;  %367 = vst [vmem:[#allocation5 + $0x2c0] sm:$0xff] %v239_v50  ;;  %v241_v55 = vmul.f32 0.044194173, %v113_v52  ;;  %v242_v56 = vmul.f32 0.044194173, %v114_v53 }
  0x4c   :  { %368 = vst [vmem:[#allocation5 + $0x2c8] sm:$0xff] %v240_v51  ;;  %v243_v57 = vmul.f32 0.044194173, %v115_v54  ;;  %v116_v58 = vld [vmem:[#allocation2 + $0x2e8] sm:$0xff]  ;;  %v117_v59 = vld [vmem:[#allocation2 + $0x2f0] sm:$0xff]  ;;  %v118_v60 = vld [vmem:[#allocation2 + $0x2f8] sm:$0xff] }
  0x4d   :  { %369 = vst [vmem:[#allocation5 + $0x2d0] sm:$0xff] %v241_v55  ;;  %370 = vst [vmem:[#allocation5 + $0x2d8] sm:$0xff] %v242_v56  ;;  %v244_v61 = vmul.f32 0.044194173, %v116_v58  ;;  %v245_v62 = vmul.f32 0.044194173, %v117_v59 }
  0x4e   :  { %371 = vst [vmem:[#allocation5 + $0x2e0] sm:$0xff] %v243_v57  ;;  %v246_v63 = vmul.f32 0.044194173, %v118_v60  ;;  %v119_v0 = vld [vmem:[#allocation2 + $0x300] sm:$0xff]  ;;  %v120_v1 = vld [vmem:[#allocation2 + $0x308] sm:$0xff]  ;;  %v121_v2 = vld [vmem:[#allocation2 + $0x310] sm:$0xff] }
  0x4f   :  { %372 = vst [vmem:[#allocation5 + $0x2e8] sm:$0xff] %v244_v61  ;;  %373 = vst [vmem:[#allocation5 + $0x2f0] sm:$0xff] %v245_v62  ;;  %v247_v3 = vmul.f32 0.044194173, %v119_v0  ;;  %v248_v4 = vmul.f32 0.044194173, %v120_v1 }
  0x50   :  { %374 = vst [vmem:[#allocation5 + $0x2f8] sm:$0xff] %v246_v63  ;;  %v249_v5 = vmul.f32 0.044194173, %v121_v2  ;;  %v122_v6 = vld [vmem:[#allocation2 + $0x318] sm:$0xff]  ;;  %v123_v7 = vld [vmem:[#allocation2 + $0x320] sm:$0xff]  ;;  %v124_v8 = vld [vmem:[#allocation2 + $0x328] sm:$0xff] }
  0x51   :  { %375 = vst [vmem:[#allocation5 + $0x300] sm:$0xff] %v247_v3  ;;  %376 = vst [vmem:[#allocation5 + $0x308] sm:$0xff] %v248_v4  ;;  %v250_v9 = vmul.f32 0.044194173, %v122_v6  ;;  %v251_v10 = vmul.f32 0.044194173, %v123_v7 }
  0x52   :  { %377 = vst [vmem:[#allocation5 + $0x310] sm:$0xff] %v249_v5  ;;  %v252_v11 = vmul.f32 0.044194173, %v124_v8  ;;  %v125_v12 = vld [vmem:[#allocation2 + $0x330] sm:$0xff]  ;;  %v126_v13 = vld [vmem:[#allocation2 + $0x338] sm:$0xff]  ;;  %v127_v14 = vld [vmem:[#allocation2 + $0x340] sm:$0xff] }
  0x53   :  { %378 = vst [vmem:[#allocation5 + $0x318] sm:$0xff] %v250_v9  ;;  %379 = vst [vmem:[#allocation5 + $0x320] sm:$0xff] %v251_v10  ;;  %v253_v15 = vmul.f32 0.044194173, %v125_v12  ;;  %v254_v16 = vmul.f32 0.044194173, %v126_v13 }
  0x54   :  { %380 = vst [vmem:[#allocation5 + $0x328] sm:$0xff] %v252_v11  ;;  %v255_v17 = vmul.f32 0.044194173, %v127_v14  ;;  %v128_v18 = vld [vmem:[#allocation2 + $0x348] sm:$0xff]  ;;  %v129_v19 = vld [vmem:[#allocation2 + $0x350] sm:$0xff]  ;;  %v130_v20 = vld [vmem:[#allocation2 + $0x358] sm:$0xff] }
  0x55   :  { %381 = vst [vmem:[#allocation5 + $0x330] sm:$0xff] %v253_v15  ;;  %382 = vst [vmem:[#allocation5 + $0x338] sm:$0xff] %v254_v16  ;;  %v256_v21 = vmul.f32 0.044194173, %v128_v18  ;;  %v257_v22 = vmul.f32 0.044194173, %v129_v19 }
  0x56   :  { %383 = vst [vmem:[#allocation5 + $0x340] sm:$0xff] %v255_v17  ;;  %v258_v23 = vmul.f32 0.044194173, %v130_v20  ;;  %v131_v24 = vld [vmem:[#allocation2 + $0x360] sm:$0xff]  ;;  %v132_v25 = vld [vmem:[#allocation2 + $0x368] sm:$0xff]  ;;  %v133_v26 = vld [vmem:[#allocation2 + $0x370] sm:$0xff] }
  0x57   :  { %384 = vst [vmem:[#allocation5 + $0x348] sm:$0xff] %v256_v21  ;;  %385 = vst [vmem:[#allocation5 + $0x350] sm:$0xff] %v257_v22  ;;  %v259_v27 = vmul.f32 0.044194173, %v131_v24  ;;  %v260_v28 = vmul.f32 0.044194173, %v132_v25 }
  0x58   :  { %386 = vst [vmem:[#allocation5 + $0x358] sm:$0xff] %v258_v23  ;;  %v261_v29 = vmul.f32 0.044194173, %v133_v26  ;;  %v134_v30 = vld [vmem:[#allocation2 + $0x378] sm:$0xff]  ;;  %v135_v31 = vld [vmem:[#allocation2 + $0x380] sm:$0xff]  ;;  %v136_v32 = vld [vmem:[#allocation2 + $0x388] sm:$0xff] }
  0x59   :  { %387 = vst [vmem:[#allocation5 + $0x360] sm:$0xff] %v259_v27  ;;  %388 = vst [vmem:[#allocation5 + $0x368] sm:$0xff] %v260_v28  ;;  %v262_v33 = vmul.f32 0.044194173, %v134_v30  ;;  %v263_v34 = vmul.f32 0.044194173, %v135_v31 }
  0x5a   :  { %389 = vst [vmem:[#allocation5 + $0x370] sm:$0xff] %v261_v29  ;;  %v264_v35 = vmul.f32 0.044194173, %v136_v32  ;;  %v137_v36 = vld [vmem:[#allocation2 + $0x390] sm:$0xff]  ;;  %v138_v37 = vld [vmem:[#allocation2 + $0x398] sm:$0xff]  ;;  %v139_v38 = vld [vmem:[#allocation2 + $0x3a0] sm:$0xff] }
  0x5b   :  { %390 = vst [vmem:[#allocation5 + $0x378] sm:$0xff] %v262_v33  ;;  %391 = vst [vmem:[#allocation5 + $0x380] sm:$0xff] %v263_v34  ;;  %v265_v39 = vmul.f32 0.044194173, %v137_v36  ;;  %v266_v40 = vmul.f32 0.044194173, %v138_v37 }
  0x5c   :  { %392 = vst [vmem:[#allocation5 + $0x388] sm:$0xff] %v264_v35  ;;  %v267_v41 = vmul.f32 0.044194173, %v139_v38  ;;  %v140_v42 = vld [vmem:[#allocation2 + $0x3a8] sm:$0xff]  ;;  %v141_v43 = vld [vmem:[#allocation2 + $0x3b0] sm:$0xff]  ;;  %v142_v44 = vld [vmem:[#allocation2 + $0x3b8] sm:$0xff] }
  0x5d   :  { %393 = vst [vmem:[#allocation5 + $0x390] sm:$0xff] %v265_v39  ;;  %394 = vst [vmem:[#allocation5 + $0x398] sm:$0xff] %v266_v40  ;;  %v268_v45 = vmul.f32 0.044194173, %v140_v42  ;;  %v269_v46 = vmul.f32 0.044194173, %v141_v43 }
  0x5e   :  { %395 = vst [vmem:[#allocation5 + $0x3a0] sm:$0xff] %v267_v41  ;;  %v270_v47 = vmul.f32 0.044194173, %v142_v44  ;;  %v143_v48 = vld [vmem:[#allocation2 + $0x3c0] sm:$0xff]  ;;  %v144_v49 = vld [vmem:[#allocation2 + $0x3c8] sm:$0xff]  ;;  %v145_v50 = vld [vmem:[#allocation2 + $0x3d0] sm:$0xff] }
  0x5f   :  { %396 = vst [vmem:[#allocation5 + $0x3a8] sm:$0xff] %v268_v45  ;;  %397 = vst [vmem:[#allocation5 + $0x3b0] sm:$0xff] %v269_v46  ;;  %v271_v51 = vmul.f32 0.044194173, %v143_v48  ;;  %v272_v52 = vmul.f32 0.044194173, %v144_v49 }
  0x60   :  { %398 = vst [vmem:[#allocation5 + $0x3b8] sm:$0xff] %v270_v47  ;;  %v273_v53 = vmul.f32 0.044194173, %v145_v50  ;;  %v146_v54 = vld [vmem:[#allocation2 + $0x3d8] sm:$0xff]  ;;  %v147_v55 = vld [vmem:[#allocation2 + $0x3e0] sm:$0xff]  ;;  %v148_v56 = vld [vmem:[#allocation2 + $0x3e8] sm:$0xff] }
  0x61   :  { %399 = vst [vmem:[#allocation5 + $0x3c0] sm:$0xff] %v271_v51  ;;  %400 = vst [vmem:[#allocation5 + $0x3c8] sm:$0xff] %v272_v52  ;;  %v274_v57 = vmul.f32 0.044194173, %v146_v54  ;;  %v275_v58 = vmul.f32 0.044194173, %v147_v55 }
  0x62   :  { %401 = vst [vmem:[#allocation5 + $0x3d0] sm:$0xff] %v273_v53  ;;  %v276_v59 = vmul.f32 0.044194173, %v148_v56  ;;  %v149_v60 = vld [vmem:[#allocation2 + $0x3f0] sm:$0xff]  ;;  %v150_v61 = vld [vmem:[#allocation2 + $0x3f8] sm:$0xff]  ;;  %s448_s14 = scalar_lea.vmem %s413_s13, 16384 }
  0x63   :  { %402 = vst [vmem:[#allocation5 + $0x3d8] sm:$0xff] %v274_v57  ;;  %403 = vst [vmem:[#allocation5 + $0x3e0] sm:$0xff] %v275_v58  ;;  %v277_v62 = vmul.f32 0.044194173, %v149_v60  ;;  %v278_v63 = vmul.f32 0.044194173, %v150_v61  ;;  %p449_p5 = scmp.ne.s32.totalorder %s413_s13, %s448_s14  ;;  %p454_p7 = scmp.lt.s32.totalorder %s448_s14, %s448_s14 }
  0x64   :  { %404 = vst [vmem:[#allocation5 + $0x3e8] sm:$0xff] %v276_v59 }
  0x65   :  { %405 = vst [vmem:[#allocation5 + $0x3f0] sm:$0xff] %v277_v62  ;;  %406 = vst [vmem:[#allocation5 + $0x3f8] sm:$0xff] %v278_v63  ;;  %p455_p8 = por %p454_p7, %p453_p6 }
  0x67   :  { %p456_p9 = pnand %p455_p8, %p449_p5 }
  0x69   :  { %459 = shalt.err (!%p456_p9)
}
  0x6a   :  { %418 = dma.vmem_to_hbm [thread:$0]  %s413_s13, 16384, %s499_s1, [#allocation4], %s473_s9, %s473_s9, %s474_s10  }
  0x6b   :  { %470 = dma.done.wait [#allocation4], 16384  }
  0x6c   :  { %471 = vsyncadd [#allocation4], 4294950912 }
  0x6d   :  { %422 = vsyncpa [#allocation3], 1 }
  0x6e   :  { %423 = vsyncpa [#allocation4], 1 }

</bundles_post_ra>
